<compile_context>
chip_gen: v5e
topology: v5e:2x2
jax: 0.10.0
libtpu: 0.0.40
codegen_flags: <defaults>
</compile_context>

<pallas_src>
import jax
import jax.numpy as jnp
import numpy as np
from jax.experimental import pallas as pl
from jax.experimental.pallas import tpu as pltpu

SIZE = 32   # feature size (per-dimension variance size)
N = 8       # batch


def _softplus_raw(x):
    # Matches the module's softplus_raw: log(1 + exp(x)) with B = 1 (no stabilization,
    # to stay semantically identical to the PyTorch reference).
    return jnp.log(1.0 + jnp.exp(x))


def prob_loss_kernel(mean_ref, logvar_ref, tgt_ref, bounds_ref, out_ref):
    # bounds_ref: (2, lanes) = [max_logvar_tiled ; min_logvar_tiled]
    maxlv = bounds_ref[0:1, :]          # (1, lanes) -> sublane-broadcast over rows
    minlv = bounds_ref[1:2, :]          # (1, lanes)

    logvar = logvar_ref[...]            # (rows, lanes)

    # Soft-clamp logvar between min_logvar and max_logvar (VPU + EUP, elementwise).
    logvar = maxlv - _softplus_raw(maxlv - logvar)
    logvar = minlv + _softplus_raw(logvar - minlv)

    # One exp per element; divide folded into exp(-logvar); log(var) folded to logvar.
    inv_var = jnp.exp(-logvar)
    diff = mean_ref[...] - tgt_ref[...]

    # trace(diff @ (diff*inv_var).T) + sum(log(var))  ==  sum(diff^2 * inv_var + logvar)
    # Single fused cross-lane/cross-sublane reduction (one XLU reduce instead of two).
    out_ref[0, 0] = jnp.sum(diff * diff * inv_var + logvar)


def prob_loss(inputs, targets, max_logvar, min_logvar):
    n, size = targets.shape

    # Split mean/logvar OUTSIDE the kernel: the lane-offset slice inputs[:, size:] is
    # layout-hostile inside a vreg but free as an XLA op in the wrapper.
    mean = inputs[:, :size]
    logvar = inputs[:, size:]

    # Lane-density packing: view the purely elementwise (n, size) problem as
    # (n*size/128, 128) when shapes allow, so every VPU/EUP op uses all 128 lanes.
    total = n * size
    if total % 128 == 0 and 128 % size == 0:
        lanes = 128
    else:
        lanes = size
    rows = total // lanes
    rep = lanes // size

    mean_p = mean.reshape(rows, lanes)
    logvar_p = logvar.reshape(rows, lanes)
    tgt_p = targets.reshape(rows, lanes)

    # One combined bounds input: row 0 = max_logvar tiled to lane width, row 1 = min.
    bounds = jnp.concatenate(
        [jnp.tile(max_logvar.astype(jnp.float32), (1, rep)),
         jnp.tile(min_logvar.astype(jnp.float32), (1, rep))],
        axis=0,
    )  # (2, lanes)

    out = pl.pallas_call(
        prob_loss_kernel,
        out_shape=jax.ShapeDtypeStruct((1, 1), jnp.float32),
        in_specs=[
            pl.BlockSpec(memory_space=pltpu.MemorySpace.VMEM),  # mean    (rows, lanes)
            pl.BlockSpec(memory_space=pltpu.MemorySpace.VMEM),  # logvar  (rows, lanes)
            pl.BlockSpec(memory_space=pltpu.MemorySpace.VMEM),  # targets (rows, lanes)
            pl.BlockSpec(memory_space=pltpu.MemorySpace.VMEM),  # bounds  (2, lanes)
        ],
        out_specs=pl.BlockSpec(memory_space=pltpu.MemorySpace.SMEM),
    )(mean_p, logvar_p, tgt_p, bounds)
    return out[0, 0]


def prob_loss_ref(inputs, targets, max_logvar, min_logvar):
    size = targets.shape[1]
    mean = inputs[:, :size]
    logvar = inputs[:, size:]
    logvar = max_logvar - jnp.log(1.0 + jnp.exp(max_logvar - logvar))
    logvar = min_logvar + jnp.log(1.0 + jnp.exp(logvar - min_logvar))
    var = jnp.exp(logvar)
    diff = mean - targets
    mid = diff / var
    return jnp.trace(diff @ mid.T) + jnp.sum(jnp.log(var))


if __name__ == "__main__":
    # Deterministic parameter init, same as the module __init__:
    max_logvar = jnp.ones((1, SIZE), dtype=jnp.float32)
    min_logvar = -jnp.ones((1, SIZE), dtype=jnp.float32)

    key = jax.random.PRNGKey(0)
    k1, k2 = jax.random.split(key)
    inputs = jax.random.normal(k1, (N, 2 * SIZE), dtype=jnp.float32)
    targets = jax.random.normal(k2, (N, SIZE), dtype=jnp.float32)

    out = prob_loss(inputs, targets, max_logvar, min_logvar)
    out = jax.block_until_ready(out)

    ref = prob_loss_ref(inputs, targets, max_logvar, min_logvar)
    np.testing.assert_allclose(np.asarray(out), np.asarray(ref), rtol=1e-5, atol=1e-5)

    print("KERNEL_OK")
</pallas_src>

<mosaic_0001>
module attributes {stable_mosaic.version = 11 : i64} {
  func.func @prob_loss_kernel(%arg0: memref<2x128xf32, #tpu.memory_space<vmem>>, %arg1: memref<2x128xf32, #tpu.memory_space<vmem>>, %arg2: memref<2x128xf32, #tpu.memory_space<vmem>>, %arg3: memref<2x128xf32, #tpu.memory_space<vmem>>, %arg4: memref<1x1xf32, #tpu.memory_space<smem>>) attributes {dimension_semantics = [], scalar_prefetch = 0 : i64, scratch_operands = 0 : i64, tpu.core_type = #tpu.core_type<tc>} {
    %c0 = arith.constant 0 : index
    %c0_0 = arith.constant 0 : index
    %0 = vector.load %arg3[%c0, %c0_0] : memref<2x128xf32, #tpu.memory_space<vmem>>, vector<1x128xf32>
    %c1 = arith.constant 1 : index
    %c0_1 = arith.constant 0 : index
    %1 = vector.load %arg3[%c1, %c0_1] : memref<2x128xf32, #tpu.memory_space<vmem>>, vector<1x128xf32>
    %c0_2 = arith.constant 0 : index
    %c0_3 = arith.constant 0 : index
    %2 = vector.load %arg1[%c0_2, %c0_3] : memref<2x128xf32, #tpu.memory_space<vmem>>, vector<2x128xf32>
    %3 = vector.broadcast %0 : vector<1x128xf32> to vector<2x128xf32>
    %4 = arith.subf %3, %2 : vector<2x128xf32>
    %5 = math.exp %4 : vector<2x128xf32>
    %cst = arith.constant 1.000000e+00 : f32
    %6 = vector.broadcast %cst : f32 to vector<2x128xf32>
    %7 = arith.addf %6, %5 : vector<2x128xf32>
    %8 = math.log %7 : vector<2x128xf32>
    %9 = vector.broadcast %0 : vector<1x128xf32> to vector<2x128xf32>
    %10 = arith.subf %9, %8 : vector<2x128xf32>
    %11 = vector.broadcast %1 : vector<1x128xf32> to vector<2x128xf32>
    %12 = arith.subf %10, %11 : vector<2x128xf32>
    %13 = math.exp %12 : vector<2x128xf32>
    %cst_4 = arith.constant 1.000000e+00 : f32
    %14 = vector.broadcast %cst_4 : f32 to vector<2x128xf32>
    %15 = arith.addf %14, %13 : vector<2x128xf32>
    %16 = math.log %15 : vector<2x128xf32>
    %17 = vector.broadcast %1 : vector<1x128xf32> to vector<2x128xf32>
    %18 = arith.addf %17, %16 : vector<2x128xf32>
    %cst_5 = arith.constant 0.000000e+00 : f32
    %19 = vector.broadcast %cst_5 : f32 to vector<2x128xf32>
    %20 = arith.subf %19, %18 : vector<2x128xf32>
    %21 = math.exp %20 : vector<2x128xf32>
    %c0_6 = arith.constant 0 : index
    %c0_7 = arith.constant 0 : index
    %22 = vector.load %arg0[%c0_6, %c0_7] : memref<2x128xf32, #tpu.memory_space<vmem>>, vector<2x128xf32>
    %c0_8 = arith.constant 0 : index
    %c0_9 = arith.constant 0 : index
    %23 = vector.load %arg2[%c0_8, %c0_9] : memref<2x128xf32, #tpu.memory_space<vmem>>, vector<2x128xf32>
    %24 = arith.subf %22, %23 : vector<2x128xf32>
    %25 = arith.mulf %24, %24 : vector<2x128xf32>
    %26 = arith.mulf %25, %21 : vector<2x128xf32>
    %27 = arith.addf %26, %18 : vector<2x128xf32>
    %28 = vector.shape_cast %27 : vector<2x128xf32> to vector<1x2x128xf32>
    %cst_10 = arith.constant dense<0.000000e+00> : vector<1xf32>
    %29 = vector.multi_reduction <add>, %28, %cst_10 [1, 2] : vector<1x2x128xf32> to vector<1xf32>
    %30 = vector.shape_cast %29 : vector<1xf32> to vector<1x1x1xf32>
    %31 = vector.extract %30[0, 0, 0] : f32 from vector<1x1x1xf32>
    %c0_11 = arith.constant 0 : index
    %c0_12 = arith.constant 0 : index
    %32 = memref.load %arg4[%c0_11, %c0_12] : memref<1x1xf32, #tpu.memory_space<smem>>
    memref.store %31, %arg4[%c0_11, %c0_12] : memref<1x1xf32, #tpu.memory_space<smem>>
    return
  }
}

</mosaic_0001>

<bundles_post_ra>
// kernel: tpu_custom_call.1
= control target key start
LH: loop header
LB: loop body
LE: loop exit
PB: predicated region body
PF: predicated region fallthrough
CT: control target
= control target key end

     0   :  { %9 = vsyncpa [#allocation3], 0  ;;  %s272_s0 = inlined_call_operand.hbm [shape: f32[2,128], index: 0, kind: input, shape index: {}]   ;;  %s273_s1 = inlined_call_operand.hbm [shape: f32[2,128], index: 1, kind: input, shape index: {}]   ;;  %s274_s2 = inlined_call_operand.hbm [shape: f32[2,128], index: 2, kind: input, shape index: {}]   ;;  %s275_s3 = inlined_call_operand.vmem [shape: f32[2,128], index: 3, kind: input, shape index: {}]   ;;  %s276_s4 = inlined_call_operand.hbm [shape: f32[1,1], index: 4, kind: output, shape index: {}]  }
   0x1   :  { %10 = vsyncpa [#allocation6], 0  ;;  %s28_s17 = sshll.u32 %s273_s1, 4  ;;  %s29_s17 = int_to_ptr.hbm [resolvable:$true] %s28_s17 }
   0x2   :  { %11 = vsyncpa [#allocation4], 0  ;;  %s225_s18 = smov [#allocation5]   ;;  %s17_s22 = sshll.u32 %s272_s0, 4  ;;  %s18_s22 = int_to_ptr.hbm [resolvable:$true] %s17_s22 }
   0x3   :  { %s30_s19 = sshll.u32 %s225_s18, 4  ;;  %s226_s23 = smov [#allocation2]   ;;  %s31_s19 = int_to_ptr.vmem [resolvable:$true] %s30_s19 }
   0x4   :  { %33 = dma.hbm_to_vmem [thread:$0]  %s29_s17, 32, %s31_s19, [#allocation6]  }
   0x5   :  { %s19_s24 = sshll.u32 %s226_s23, 4  ;;  %s39_s27 = sshll.u32 %s274_s2, 4  ;;  %s20_s24 = int_to_ptr.vmem [resolvable:$true] %s19_s24  ;;  %s40_s27 = int_to_ptr.hbm [resolvable:$true] %s39_s27 }
   0x6   :  { %22 = dma.hbm_to_vmem [thread:$0]  %s18_s22, 32, %s20_s24, [#allocation3]  }
   0x7   :  { %s227_s1 = smov [#allocation7]  }
   0x8   :  { %s41_s28 = sshll.u32 %s227_s1, 4  ;;  %s42_s28 = int_to_ptr.vmem [resolvable:$true] %s41_s28 }
   0x9   :  { %44 = dma.hbm_to_vmem [thread:$0]  %s40_s27, 32, %s42_s28, [#allocation6]  }
   0xa   :  { %219 = dma.done.wait [#allocation3], 32  }
   0xb   :  { %220 = vsyncadd [#allocation3], 4294967264 }
   0xc   :  { %221 = dma.done.wait [#allocation6], 64  }
   0xd   :  { %222 = vsyncadd [#allocation6], 4294967232  ;;  %v61_v0 = vld [vmem:[#allocation5] sm:$0x3]  ;;  %v123_v1 = vld [vmem:[%s275_s3] ss:$0 sm:$0xff] }
   0xe   :  { %v63_v2 = vsub.f32 %v123_v1, %v61_v0  ;;  %v124_v8 = vld [vmem:[%s275_s3 + $0x1] ss:$0 sm:$0xff]  ;;  %v82_v19 = vld [vmem:[#allocation7] sm:$0x3]  ;;  %vm87_vm0 = vcmask 1041408   ;;  %s105_s6 = sshll.u32 %s276_s4, 4  ;;  %s106_s6 = int_to_ptr.hbm [resolvable:$true] %s105_s6 }
   0xf   :  { %v81_v18 = vld [vmem:[#allocation2] sm:$0x3]  ;;  %s228_s8 = smov [#allocation8]  }
  0x10   :  { %v64_v3 = vmul.f32 1.442695, %v63_v2  ;;  %v83_v21 = vsub.f32 %v81_v18, %v82_v19 }
  0x12   :  { %125 = vpow2.f32 %v64_v3  ;;  %v84_v22 = vmul.f32 %v83_v21, %v83_v21 }
  0x18   :  { %v126_v4 = vpop.eup %125 }
  0x19   :  { %v66_v5 = vadd.f32 1.0, %v126_v4 }
  0x1b   :  { %127 = vlog2.f32 %v66_v5 }
  0x21   :  { %v128_v6 = vpop.eup %127 }
  0x22   :  { %v68_v7 = vmul.f32 0.6931472, %v128_v6 }
  0x24   :  { %v69_v9 = vsub.f32 %v123_v1, %v68_v7 }
  0x26   :  { %v71_v10 = vsub.f32 %v69_v9, %v124_v8 }
  0x28   :  { %v72_v11 = vmul.f32 1.442695, %v71_v10 }
  0x2a   :  { %129 = vpow2.f32 %v72_v11 }
  0x30   :  { %v130_v12 = vpop.eup %129 }
  0x31   :  { %v74_v13 = vadd.f32 1.0, %v130_v12 }
  0x33   :  { %131 = vlog2.f32 %v74_v13 }
  0x39   :  { %v132_v14 = vpop.eup %131 }
  0x3a   :  { %v76_v15 = vmul.f32 0.6931472, %v132_v14 }
  0x3c   :  { %v77_v16 = vadd.f32 %v124_v8, %v76_v15 }
  0x3e   :  { %v78_v17 = vsub.f32 0.0, %v77_v16 }
  0x40   :  { %v79_v20 = vmul.f32 1.442695, %v78_v17 }
  0x42   :  { %133 = vpow2.f32 %v79_v20 }
  0x48   :  { %v134_v23 = vpop.eup %133 }
  0x49   :  { %v85_v24 = vmul.f32 %v134_v23, %v84_v22 }
  0x4b   :  { %v86_v25 = vadd.f32 %v85_v24, %v77_v16 }
  0x4d   :  { %v88_v26 = vsel %vm87_vm0, %v86_v25, 0.0 }
  0x4e   :  { %89 = vadd.xlane.f32.xlu0 %v88_v26 }
  0xc1   :  { %v90_v27 = vpop.xlane.xlu0 %89 }
  0xc2   :  { %v91_v28 = vrot.slane %v90_v27, 4 }
  0xc4   :  { %v92_v29 = vadd.f32 %v91_v28, %v90_v27 }
  0xc6   :  { %v93_v30 = vrot.slane %v92_v29, 2 }
  0xc8   :  { %v94_v31 = vadd.f32 %v93_v30, %v92_v29 }
  0xca   :  { %v95_v32 = vrot.slane %v94_v31, 1 }
  0xcc   :  { %v96_v33 = vadd.f32 %v95_v32, %v94_v31 }
  0xce   :  { %117 = vpush %v96_v33 }
  0xff   :  { %s118_s7 = spop %117 }
 0x100   :  { %99 = sst [smem:[#allocation8]] %s118_s7 }
 0x101   :  { %108 = dma.smem_to_hbm %s228_s8, 16, %s106_s6, [#allocation4]  }
 0x102   :  { %223 = dma.done.wait [#allocation4], 16  }
 0x103   :  { %224 = vsyncadd [#allocation4], 4294967280 }
 0x104   :  { %113 = sfence }
 0x105   :  { %114 = vsyncpa [#allocation3], 1 }
 0x106   :  { %115 = vsyncpa [#allocation6], 1 }
 0x107   :  { %116 = vsyncpa [#allocation4], 1 }

</bundles_post_ra>
